<compile_context>
chip_gen: v7x
topology: tpu7x:2x2x1
jax: 0.10.0
libtpu: 0.0.40
codegen_flags: <defaults>
</compile_context>

<pallas_src>
import math

import numpy as np
import jax
import jax.numpy as jnp
from jax.experimental import pallas as pl
from jax.experimental.pallas import tpu as pltpu


def make_pos_encoding_params(dim, base=10000.0, bias=0.0):
    """Deterministic parameter construction, mirroring PosEncoding.__init__."""
    p, sft = [], []
    for i in range(dim):
        b = (i - i % 2) / dim
        p.append(base ** (-b))
        sft.append(np.pi / 2.0 + bias if i % 2 else bias)
    base_arr = jnp.asarray(np.asarray(p, dtype=np.float32)).reshape(1, -1)
    sft_arr = jnp.asarray(np.asarray(sft, dtype=np.float32)).reshape(1, -1)
    return base_arr, sft_arr


def _pos_encoding_kernel(pos_ref, expand_ref, sft_ref, out_ref):
    # pos_ref:    (TR, pack)         packed positions
    # expand_ref: (pack, pack*dim)   block-diagonal 1/base expansion matrix
    # sft_ref:    (1, pack*dim)      tiled phase shifts
    # out_ref:    (TR, pack*dim)     lane-dense output rows
    phase = jnp.dot(pos_ref[...], expand_ref[...],
                    preferred_element_type=jnp.float32,
                    precision=jax.lax.Precision.HIGHEST)
    out_ref[...] = jnp.sin(phase + sft_ref[...]).astype(out_ref.dtype)


def _choose_pack(dim):
    # Smallest pack making pack*dim a multiple of 128; fall back to 1 when the
    # packed row would get unreasonably wide (odd / large dims).
    pack = 128 // math.gcd(dim, 128)
    if pack > 1 and pack * dim > 512:
        pack = 1
    return pack


def pos_encoding(pos, base_arr, sft_arr, *, tile_rows=4096, out_dtype=jnp.float32):
    """pos: any-shaped float/int array (or list). Returns (N, dim) out_dtype."""
    if isinstance(pos, (list, tuple)):
        pos = jnp.asarray(pos, dtype=jnp.float32)
    pos = jnp.asarray(pos, dtype=jnp.float32).reshape(-1)
    n = int(pos.shape[0])
    dim = int(base_arr.shape[-1])

    inv_base = (1.0 / jnp.asarray(base_arr, jnp.float32)).reshape(1, dim)
    sft = jnp.asarray(sft_arr, jnp.float32).reshape(1, dim)

    pack = _choose_pack(dim)
    lane_w = pack * dim

    # Block-diagonal expansion matrix: expand[j, j*dim + d] = inv_base[d].
    expand = (jnp.eye(pack, dtype=jnp.float32)[:, :, None]
              * inv_base[0][None, None, :]).reshape(pack, lane_w)
    sft_wide = jnp.tile(sft, (1, pack))

    # Packed rows; pad pos only up to a multiple of `pack` (<= pack-1 extra).
    r = -(-n // pack)
    n_pad = r * pack
    if n_pad != n:
        pos = jnp.pad(pos, (0, n_pad - n))
    pos_packed = pos.reshape(r, pack)

    # Row tile: ~2 MiB output block, multiple of 16, capped by tile_rows and
    # by the (rounded-up) number of rows actually present.
    bytes_per_row = lane_w * jnp.dtype(out_dtype).itemsize
    target_rows = max(16, (2 * 1024 * 1024) // bytes_per_row)
    tr = min(int(tile_rows), int(target_rows), max(16, ((r + 15) // 16) * 16))
    tr = max(16, (tr // 16) * 16)
    # Keep >= 2 grid steps when there is enough work (v7x megacore split).
    if tr >= r and r > 32:
        tr = max(16, ((-(-r // 2) + 15) // 16) * 16)
    grid = (-(-r // tr),)   # partial last block: Pallas masks its writeback

    out_packed = pl.pallas_call(
        _pos_encoding_kernel,
        out_shape=jax.ShapeDtypeStruct((r, lane_w), out_dtype),
        grid_spec=pltpu.PrefetchScalarGridSpec(
            num_scalar_prefetch=0,
            grid=grid,
            in_specs=[
                pl.BlockSpec((tr, pack), lambda i: (i, 0)),      # packed positions
                pl.BlockSpec((pack, lane_w), lambda i: (0, 0)),  # expand (resident)
                pl.BlockSpec((1, lane_w), lambda i: (0, 0)),     # sft (resident)
            ],
            out_specs=pl.BlockSpec((tr, lane_w), lambda i: (i, 0)),
        ),
        compiler_params=pltpu.CompilerParams(
            dimension_semantics=("parallel",),
            vmem_limit_bytes=32 * 1024 * 1024,
        ),
    )(pos_packed, expand, sft_wide)

    out = out_packed.reshape(n_pad, dim)
    if n_pad != n:
        out = out[:n]   # only when n % pack != 0 (at most pack-1 padded rows)
    return out


def _reference(pos, base_arr, sft_arr):
    # Module-faithful formula (divide, not reciprocal-multiply).
    pos = jnp.asarray(pos, dtype=jnp.float32).reshape(-1, 1)
    return jnp.sin(pos / base_arr + sft_arr)


if __name__ == "__main__":
    dim = 32
    base_arr, sft_arr = make_pos_encoding_params(dim)
    key = jax.random.PRNGKey(0)

    # Case 1: n a multiple of pack (copy-free path) but not of the row tile.
    n1 = 200
    pos1 = jax.random.uniform(key, (n1,), dtype=jnp.float32, minval=0.0, maxval=1.0)
    out1 = jax.block_until_ready(pos_encoding(pos1, base_arr, sft_arr))
    ref1 = _reference(pos1, base_arr, sft_arr)
    assert out1.shape == (n1, dim), out1.shape

    # Case 2: ragged n (exercises the pad-to-pack + tail slice path).
    n2 = 203
    pos2 = jax.random.uniform(jax.random.PRNGKey(1), (n2,), dtype=jnp.float32,
                              minval=0.0, maxval=1.0)
    out2 = jax.block_until_ready(pos_encoding(pos2, base_arr, sft_arr))
    ref2 = _reference(pos2, base_arr, sft_arr)
    assert out2.shape == (n2, dim), out2.shape

    # The highest-frequency channels have 1/base ~ 5.6e3, so a couple of f32
    # ulps of phase rounding (divide vs reciprocal-multiply, sin range-reduction
    # differences between Mosaic and XLA) move sin() by up to ~1e-3; compare
    # with a tolerance reflecting f32 phase sensitivity, not bit equality.
    err1 = float(jnp.max(jnp.abs(out1 - ref1)))
    err2 = float(jnp.max(jnp.abs(out2 - ref2)))
    assert err1 < 1e-2, f"mismatch vs reference (aligned), max abs err = {err1}"
    assert err2 < 1e-2, f"mismatch vs reference (ragged), max abs err = {err2}"

    print("KERNEL_OK")
</pallas_src>

<mosaic_0001>
module attributes {stable_mosaic.version = 11 : i64} {
  func.func @_pos_encoding_kernel(%arg0: i32, %arg1: memref<32x4xf32, #tpu.memory_space<vmem>>, %arg2: memref<4x128xf32, #tpu.memory_space<vmem>>, %arg3: memref<1x128xf32, #tpu.memory_space<vmem>>, %arg4: memref<32x128xf32, #tpu.memory_space<vmem>>) attributes {dimension_semantics = [#tpu.dimension_semantics<parallel>], iteration_bounds = array<i64: 2>, scalar_prefetch = 0 : i64, scratch_operands = 0 : i64, tpu.core_type = #tpu.core_type<tc>, window_params = [{transform_indices = @transform_0, window_bounds = array<i64: 32, 4>}, {pipeline_mode = #tpu.pipeline_mode<synchronous>, transform_indices = @transform_1, window_bounds = array<i64: 4, 128>}, {pipeline_mode = #tpu.pipeline_mode<synchronous>, transform_indices = @transform_2, window_bounds = array<i64: 1, 128>}, {transform_indices = @transform_3, window_bounds = array<i64: 32, 128>}]} {
    %c0 = arith.constant 0 : index
    %c0_0 = arith.constant 0 : index
    %0 = vector.load %arg1[%c0, %c0_0] : memref<32x4xf32, #tpu.memory_space<vmem>>, vector<32x4xf32>
    %c0_1 = arith.constant 0 : index
    %c0_2 = arith.constant 0 : index
    %1 = vector.load %arg2[%c0_1, %c0_2] : memref<4x128xf32, #tpu.memory_space<vmem>>, vector<4x128xf32>
    %cst = arith.constant dense<0.000000e+00> : vector<32x128xf32>
    %2 = tpu.matmul %0, %1, %cst {dimension_numbers = #tpu.dot_dimension_numbers<[1], [0], [0], [1], [0, 0, 1, 1], [], []>, precision = #tpu.contract_precision<fp32>} : vector<32x4xf32>, vector<4x128xf32>, vector<32x128xf32> -> vector<32x128xf32>
    %c0_3 = arith.constant 0 : index
    %c0_4 = arith.constant 0 : index
    %3 = vector.load %arg3[%c0_3, %c0_4] : memref<1x128xf32, #tpu.memory_space<vmem>>, vector<1x128xf32>
    %4 = vector.broadcast %3 : vector<1x128xf32> to vector<32x128xf32>
    %5 = arith.addf %2, %4 : vector<32x128xf32>
    %6 = math.sin %5 : vector<32x128xf32>
    %c0_5 = arith.constant 0 : index
    %c0_6 = arith.constant 0 : index
    %7 = vector.load %arg4[%c0_5, %c0_6] : memref<32x128xf32, #tpu.memory_space<vmem>>, vector<32x128xf32>
    tpu.vector_store %arg4[%c0_5, %c0_6], %6 {strides = array<i32>} : memref<32x128xf32, #tpu.memory_space<vmem>>, vector<32x128xf32>,
    return
  }
  func.func @transform_0(%arg0: i32) -> (i32, i32) {
    %c0_i32 = arith.constant 0 : i32
    %c0_i32_0 = arith.constant 0 : i32
    return %arg0, %c0_i32 : i32, i32
  }
  func.func @transform_1(%arg0: i32) -> (i32, i32) {
    %c0_i32 = arith.constant 0 : i32
    %c0_i32_0 = arith.constant 0 : i32
    %c0_i32_1 = arith.constant 0 : i32
    return %c0_i32, %c0_i32_0 : i32, i32
  }
  func.func @transform_2(%arg0: i32) -> (i32, i32) {
    %c0_i32 = arith.constant 0 : i32
    %c0_i32_0 = arith.constant 0 : i32
    %c0_i32_1 = arith.constant 0 : i32
    return %c0_i32, %c0_i32_0 : i32, i32
  }
  func.func @transform_3(%arg0: i32) -> (i32, i32) {
    %c0_i32 = arith.constant 0 : i32
    %c0_i32_0 = arith.constant 0 : i32
    return %arg0, %c0_i32 : i32, i32
  }
}

</mosaic_0001>

<bundles_post_ra>
// kernel: tpu_custom_call.1
= control target key start
LH: loop header
LB: loop body
LE: loop exit
PB: predicated region body
PF: predicated region fallthrough
CT: control target
= control target key end

     0   :  { %8 = vsyncpa [#allocation3], 0  ;;  %s2034_s0 = inlined_call_operand.vmem [shape: f32[50,4], index: 0, kind: input, shape index: {}]   ;;  %s2035_s1 = inlined_call_operand.vmem [shape: f32[4,128], index: 1, kind: input, shape index: {}]   ;;  %s2036_s2 = inlined_call_operand.vmem [shape: f32[1,128], index: 2, kind: input, shape index: {}]   ;;  %s2037_s3 = inlined_call_operand.hbm [shape: f32[50,128], index: 3, kind: output, shape index: {}]  }
   0x1   :  { %10 = vsyncpa [#allocation3 + $0x1], 0  ;;  %s1609_s12 = smov 0   ;;  %s1611_s13 = smov 0  }
   0x2   :  { %s1613_s14 = smov 0   ;;  %s1615_s15 = smov 0  }
   0x3 LB: > { %s1630_s16 = sadd.s32 4294967295, %s1578_s15   ;;  %s1302_s17 = sadd.s32 4294967294, %s1578_s15   ;;  %s1578_s15 = sphi %s1615_s15, %s2047_s15   ;;  %s1574_s14 = sphi %s1613_s14, %s2046_s14   ;;  %s1570_s13 = sphi %s1611_s13, %s2045_s13   ;;  %s1566_s12 = sphi %s1609_s12, %s2044_s12  }
   0x4   : > { %s1634_s18 = sadd.s32 1, %s1578_s15   ;;  %s91_s19 = sadd.s32 1, %s1574_s14 }
   0x5   : > { %s88_s20 = ssub.s32 %s1578_s15, %s1634_s18  ;;  %p101_p0 = scmp.ne.s32.totalorder %s1574_s14, %s1570_s13 }
   0x6   : > { %p89_p1 = scmp.eq.s32.totalorder %s88_s20, 0  ;;  %p102_p2 = scmp.eq.s32.totalorder %s1630_s16, 1 }
   0x7   : > { %p107_p3 = scmp.ne.s32.totalorder %s1570_s13, %s1566_s12  ;;  %p108_p4 = scmp.eq.s32.totalorder %s1302_s17, 1 }
   0x8   : > { %s1645_s21 = scalar_select %p89_p1, %s1574_s14, %s91_s19  }
   0x9   : > { %p1647_p5 = por %p102_p2, %p101_p0  ;;  %p1651_p6 = por %p108_p4, %p107_p3 }
   0xa   : > { %p1305_p7 = scmp.ge.s32.totalorder %s1578_s15, 1  ;;  %p149_p8 = scmp.lt.s32.totalorder %s1578_s15, 3 }
   0xc   : > { %p150_p9 = pnand %p1305_p7, %p149_p8 }
   0xd   : > { %v200_v0 = vld [vmem:[%s2035_s1] sm:$0xf] (!%p150_p9)  ;;  %vm221_vm0 = vcmask (!%p150_p9), 1043456   ;;  %s1661_s26 = sshll.u32 (!%p150_p9), %s1630_s16, 2  ;;  %vm208_vm1 = vcmask (!%p150_p9), 31744   ;;  %s174_s5 = sand.u32 (!%p150_p9), 1, %s1570_s13  }
   0xe   : > { %153 = sbr.rel (%p150_p9) target bundleno = 436 (0x1b4), region = 32  ;;  %v223_v1 = vsel (!%p150_p9), %vm221_vm0, %v200_v0, 0  ;;  %p182_p10 = scmp.lt.s32.totalorder (!%p150_p9), %s1661_s26, 6  ;;  %v1309_v37 = vld [vmem:[%s2036_s2] ss:$0 sm:$0xff] (!%p150_p9) }
   0xf   : > { %v226_v2 = vand.u32 (!%p150_p9), 4294901760, %v223_v1  ;;  %s1306_s8 = sshll.u32 (!%p150_p9), %s174_s5, 5  ;;  %s1973_s10 = scalar_lea.sflag (!%p150_p9), [#allocation3], %s174_s5 }
  0x10   : > { %s1930_s9 = scalar_lea.vmem (!%p150_p9), [#allocation2], %s1306_s8 }
  0x11   : > { %1390 = vmatprep.subr.mxu0 (!%p150_p9), %v226_v2  ;;  %1366 = vmatprep.subr.mxu1 (!%p150_p9), %v226_v2  ;;  %v333_v3 = vsub.f32 (!%p150_p9), %v223_v1, %v226_v2 }
  0x12   : > { %1391 = vmatpush3.msra.mxu0 (!%p150_p9), %v226_v2  ;;  %1367 = vmatpush3.msra.mxu1 (!%p150_p9), %v226_v2 }
  0x13   : > { %v334_v4 = vand.u32 (!%p150_p9), 4294901760, %v333_v3 }
  0x15   : > { %s183_s27 = scalar_select %p182_p10, %s1661_s26, 6  ;;  %v335_v10 = vsub.f32 %v333_v3, %v334_v4  ;;  %1398 = vmatprep.subr.mxu0 %v334_v4 }
  0x16   : > { %s1229_s11 = ssub.s32 (%p1647_p5), 7, %s1661_s26 }
  0x17   : > { %s1308_s28 = sshll.u32 %s183_s27, 3  ;;  %v336_v17 = vand.u32 4294901760, %v335_v10  ;;  %p1230_p11 = scmp.lt.s32.totalorder (%p1647_p5), %s1229_s11, 4 }
  0x18   : > { %s185_s4 = scalar_lea.vmem %s2034_s0, %s1308_s28 }
  0x19   : > { %v196_v5 = vld [vmem:[%s185_s4] sm:$0xff]  ;;  %v197_v6 = vld [vmem:[%s185_s4 + $0x8] sm:$0xff]  ;;  %v198_v7 = vld [vmem:[%s185_s4 + $0x10] sm:$0xff]  ;;  %1374 = vmatprep.subr.mxu1 %v336_v17 }
  0x1a   : > { %v210_v8 = vsel %vm208_vm1, %v196_v5, 0  ;;  %v213_v9 = vsel %vm208_vm1, %v197_v6, 0  ;;  %v216_v11 = vsel %vm208_vm1, %v198_v7, 0  ;;  %v199_v12 = vld [vmem:[%s185_s4 + $0x18] sm:$0xff] }
  0x1b   : > { %v291_v13 = vand.u32 4294901760, %v210_v8  ;;  %v301_v14 = vand.u32 4294901760, %v213_v9  ;;  %v311_v15 = vand.u32 4294901760, %v216_v11  ;;  %v219_v16 = vsel %vm208_vm1, %v199_v12, 0 }
  0x1c   : > { %v321_v18 = vand.u32 4294901760, %v219_v16 }
  0x1d   : > { %v292_v19 = vsub.f32 %v210_v8, %v291_v13  ;;  %v302_v20 = vsub.f32 %v213_v9, %v301_v14  ;;  %v312_v21 = vsub.f32 %v216_v11, %v311_v15 }
  0x1e   : > { %v322_v22 = vsub.f32 %v219_v16, %v321_v18 }
  0x1f   : > { %v293_v23 = vand.u32 4294901760, %v292_v19  ;;  %v303_v24 = vand.u32 4294901760, %v302_v20  ;;  %v313_v25 = vand.u32 4294901760, %v312_v21 }
  0x20   : > { %v323_v26 = vand.u32 4294901760, %v322_v22 }
  0x21   : > { %1392 = vmatprep.mubr.f32.mxu0 %v293_v23  ;;  %v294_v27 = vsub.f32 %v292_v19, %v293_v23  ;;  %v304_v28 = vsub.f32 %v302_v20, %v303_v24  ;;  %v314_v29 = vsub.f32 %v312_v21, %v313_v25  ;;  %v1584_v23 = vmov 920167782  }
  0x22   : > { %1393 = vmatmul.mubr.f32.vlgmr.msra.gmra.mrb[0].mxu0 %v303_v24  ;;  %v324_v30 = vsub.f32 %v322_v22, %v323_v26 }
  0x23   : > { %v295_v31 = vand.u32 4294901760, %v294_v27  ;;  %1395 = vmatprep.mubr.f32.mxu0 %v313_v25  ;;  %v305_v32 = vand.u32 4294901760, %v304_v28  ;;  %1399 = vmatpush3.msra.mxu0 %v334_v4  ;;  %v315_v33 = vand.u32 4294901760, %v314_v29 }
  0x24   : > { %1406 = vmatprep.subr.mxu0 %v226_v2  ;;  %v325_v34 = vand.u32 4294901760, %v324_v30  ;;  %v1585_v30 = vmov 1326507024  }
  0x25   : > { %1368 = vmatprep.mubr.f32.mxu1 %v295_v31 }
  0x26   : > { %1369 = vmatmul.mubr.f32.vlgmr.msra.gmra.mrb[0].mxu1 %v305_v32  ;;  %1396 = vmatmul.mubr.f32.gmra.mrb[2].mxu0 %v323_v26 }
  0x27   : > { %1375 = vmatpush3.msra.mxu1 %v336_v17  ;;  %1371 = vmatprep.mubr.f32.mxu1 %v315_v33  ;;  %v1581_v17 = vmov 2475754826  }
  0x28   : > { %1400 = vmatprep.mubr.f32.mxu0 %v291_v13  ;;  %1382 = vmatprep.subr.mxu1 %v333_v3 }
  0x2a   : > { %1372 = vmatmul.mubr.f32.gmra.mrb[2].mxu1 %v325_v34  ;;  %1401 = vmatmul.mubr.f32.vlgmr.msra.gmra.mrb[0].mxu0 %v301_v14 }
  0x2b   : > { %1376 = vmatprep.mubr.f32.mxu1 %v291_v13  ;;  %1403 = vmatprep.mubr.f32.mxu0 %v311_v15 }
  0x2c   : > { %1407 = vmatpush3.msra.mxu0 %v226_v2 }
  0x2e   : > { %1377 = vmatmul.mubr.f32.vlgmr.msra.gmra.mrb[0].mxu1 %v301_v14  ;;  %1404 = vmatmul.mubr.f32.gmra.mrb[2].mxu0 %v321_v18 }
  0x2f   : > { %1383 = vmatpush3.msra.mxu1 %v333_v3  ;;  %1379 = vmatprep.mubr.f32.mxu1 %v311_v15 }
  0x30   : > { %1408 = vmatprep.mubr.f32.mxu0 %v291_v13  ;;  %v1580_v13 = vmov 683565275  }
  0x32   : > { %1380 = vmatmul.mubr.f32.gmra.mrb[2].mxu1 %v321_v18  ;;  %1409 = vmatmul.mubr.f32.vlgmr.msra.gmra.mrb[0].mxu0 %v301_v14 }
  0x33   : > { %1384 = vmatprep.mubr.f32.mxu1 %v292_v19  ;;  %1411 = vmatprep.mubr.f32.mxu0 %v311_v15  ;;  %v1582_v19 = vmov 2131351028  }
  0x36   : > { %1385 = vmatmul.mubr.f32.vlgmr.msra.gmra.mrb[0].mxu1 %v302_v20  ;;  %1412 = vmatmul.mubr.f32.gmra.mrb[2].mxu0 %v321_v18 }
  0x37   : > { %1387 = vmatprep.mubr.f32.mxu1 %v312_v21  ;;  %v1583_v21 = vmov 2102212464  }
  0x3a   : > { %1388 = vmatmul.mubr.f32.gmra.mrb[2].mxu1 %v322_v22 }
 0x105   : > { %v1410_v35 = vpop.f32.mrb[0].mxu0 }
 0x106   : > { %v778_v36 = vpop.f32.mrb[1].mxu0 }
 0x109   : > { %v1386_v38 = vpop.f32.mrb[0].mxu1  ;;  %v1413_v39 = vpop.f32.mrb[2].mxu0 }
 0x10a   : > { %v1414_v40 = vadd.f32 %v1386_v38, %v1309_v37  ;;  %v495_v41 = vpop.f32.mrb[1].mxu1  ;;  %v790_v42 = vpop.f32.mrb[3].mxu0 }
 0x10b   : > { %v1416_v43 = vadd.f32 %v1309_v37, %v495_v41 }
 0x10c   : > { %v1676_v44 = vadd.f32 %v1414_v40, %v1410_v35 }
 0x10d   : > { %v1678_v45 = vadd.f32 %v1416_v43, %v778_v36  ;;  %v1389_v46 = vpop.f32.mrb[2].mxu1 }
 0x10e   : > { %v904_v47 = vand.u32 2147483647, %v1676_v44  ;;  %v907_v48 = vand.u32 2139095040, %v1676_v44  ;;  %v509_v49 = vpop.f32.mrb[3].mxu1  ;;  %v1418_v53 = vadd.f32 %v1389_v46, %v1309_v37  ;;  %vm906_vm0 = vcmp.lt.s32.totalorder %v1676_v44, 0 }
 0x10f   : > { %v800_v50 = vand.u32 2147483647, %v1678_v45  ;;  %v803_v51 = vand.u32 2139095040, %v1678_v45  ;;  %v1420_v57 = vadd.f32 %v1309_v37, %v509_v49 }
 0x110   : > { %v908_v52 = vshrl.u32 %v907_v48, 23  ;;  %v911_v54 = vand.u32 8388607, %v904_v47  ;;  %v1688_v59 = vadd.f32 %v1418_v53, %v1413_v39  ;;  %vm1773_vm15 = vcmp.le.f32.partialorder %v904_v47, 0.7853982 }
 0x111   : > { %v804_v55 = vshrl.u32 %v803_v51, 23  ;;  %v807_v56 = vand.u32 8388607, %v800_v50  ;;  %v1690_v61 = vadd.f32 %v1420_v57, %v790_v42 }
 0x112   : > { %v1314_v58 = vadd.s32 4294967169, %v908_v52  ;;  %v912_v63 = vor.u32 8388608, %v911_v54  ;;  %v1115_v2 = vand.u32 2139095040, %v1688_v59  ;;  %v1112_v11 = vand.u32 2147483647, %v1688_v59 }
 0x113   : > { %v1310_v60 = vadd.s32 4294967169, %v804_v55  ;;  %v808_v0 = vor.u32 8388608, %v807_v56 }
 0x114   : > { %v914_v62 = vadd.s32 1, %v1314_v58  ;;  %v1116_v4 = vshrl.u32 %v1115_v2, 23  ;;  %v1693_v8 = vshll.u32 %v912_v63, 8 }
 0x115   : > { %v810_v1 = vadd.s32 1, %v1310_v60  ;;  %v1697_v10 = vshll.u32 %v808_v0, 8 }
 0x116   : > { %vm915_vm2 = vcmp.gt.s32.totalorder %v914_v62, 0  ;;  %v1701_v16 = vadd.s32 4294967169, %v1116_v4 }
 0x117   : > { %v916_v3 = vsel %vm915_vm2, %v914_v62, 0  ;;  %vm811_vm3 = vcmp.gt.s32.totalorder %v810_v1, 0 }
 0x118   : > { %v917_v5 = vshrl.u32 %v916_v3, 5  ;;  %v918_v6 = vand.u32 31, %v916_v3  ;;  %v812_v7 = vsel %vm811_vm3, %v810_v1, 0 }
 0x119   : > { %v1695_v9 = vshrl.u32 %v812_v7, 5  ;;  %v814_v15 = vand.u32 31, %v812_v7 }
 0x11a   : > { %v919_v12 = vsub.s32 32, %v918_v6  ;;  %v921_v14 = vshll.u32 %v1580_v13, %v918_v6  ;;  %v924_v18 = vshll.u32 %v1581_v17, %v918_v6  ;;  %v927_v20 = vshll.u32 %v1582_v19, %v918_v6 }
 0x11b   : > { %v930_v22 = vshll.u32 %v1583_v21, %v918_v6  ;;  %v933_v24 = vshll.u32 %v1584_v23, %v918_v6  ;;  %vm936_vm4 = vcmp.lt.s32.totalorder %v917_v5, 1  ;;  %vm937_vm5 = vcmp.lt.s32.totalorder %v917_v5, 2 }
 0x11c   : > { %v922_v25 = vshrl.u32 %v1581_v17, %v919_v12  ;;  %v925_v26 = vshrl.u32 %v1582_v19, %v919_v12  ;;  %v928_v27 = vshrl.u32 %v1583_v21, %v919_v12  ;;  %v920_v28 = vshrl.u32 %v1580_v13, %v919_v12 }
 0x11d   : > { %v931_v29 = vshrl.u32 %v1584_v23, %v919_v12  ;;  %v934_v31 = vshrl.u32 %v1585_v30, %v919_v12  ;;  %v815_v35 = vsub.s32 32, %v814_v15  ;;  %vm938_vm6 = vcmp.lt.s32.totalorder %v917_v5, 3 }
 0x11e   : > { %v923_v32 = vor.u32 %v922_v25, %v921_v14  ;;  %v926_v33 = vor.u32 %v925_v26, %v924_v18  ;;  %v929_v34 = vor.u32 %v928_v27, %v927_v20  ;;  %vm939_vm7 = vcmp.lt.s32.totalorder %v917_v5, 4 }
 0x11f   : > { %v932_v36 = vor.u32 %v931_v29, %v930_v22  ;;  %v935_v37 = vor.u32 %v934_v31, %v933_v24  ;;  %v817_v48 = vshll.u32 %v1580_v13, %v814_v15  ;;  %v818_v52 = vshrl.u32 %v1581_v17, %v815_v35 }
 0x120   : > { %v940_v38 = vsel %vm936_vm4, %v920_v28, %v923_v32  ;;  %v941_v39 = vsel %vm939_vm7, %v929_v34, 2102212464  ;;  %v944_v40 = vsel %vm936_vm4, %v923_v32, %v926_v33  ;;  %v948_v41 = vsel %vm936_vm4, %v926_v33, %v929_v34 }
 0x121   : > { %v942_v42 = vsel %vm938_vm6, %v926_v33, %v941_v39  ;;  %v945_v43 = vsel %vm939_vm7, %v932_v36, 920167782  ;;  %v949_v46 = vsel %vm939_vm7, %v935_v37, 1326507024  ;;  %v820_v53 = vshll.u32 %v1581_v17, %v814_v15 }
 0x122   : > { %v946_v49 = vsel %vm938_vm6, %v929_v34, %v945_v43  ;;  %v950_v51 = vsel %vm938_vm6, %v932_v36, %v949_v46  ;;  %v943_v54 = vsel %vm937_vm5, %v940_v38, %v942_v42  ;;  %v821_v57 = vshrl.u32 %v1582_v19, %v815_v35 }
 0x123   : > { %v947_v55 = vsel %vm937_vm5, %v944_v40, %v946_v49  ;;  %v951_v56 = vsel %vm937_vm5, %v948_v41, %v950_v51  ;;  %v819_v0 = vor.u32 %v818_v52, %v817_v48  ;;  %v823_v2 = vshll.u32 %v1582_v19, %v814_v15 }
 0x124   : > { %v1724_v58 = vmul.u32.u64.low %v1693_v8, %v951_v56  ;;  %v1725_v60 = vmul.u32.u64.high %v1693_v8, %v951_v56, %v1724_v58  ;;  %v1728_v62 = vmul.u32.u64.low %v1693_v8, %v947_v55  ;;  %v1729_v63 = vmul.u32.u64.high %v1693_v8, %v947_v55, %v1728_v62 }
 0x125   : > { %v822_v1 = vor.u32 %v821_v57, %v820_v53  ;;  %v824_v3 = vshrl.u32 %v1583_v21, %v815_v35  ;;  %v816_v4 = vshrl.u32 %v1580_v13, %v815_v35  ;;  %v826_v5 = vshll.u32 %v1583_v21, %v814_v15 }
 0x126   : > { %v827_v6 = vshrl.u32 %v1584_v23, %v815_v35  ;;  %v830_v7 = vshrl.u32 %v1585_v30, %v815_v35  ;;  %v959_v12 = vmul.u32 %v1693_v8, %v943_v54  ;;  %v829_v18 = vshll.u32 %v1584_v23, %v814_v15 }
 0x127   : > { %v825_v14 = vor.u32 %v824_v3, %v823_v2  ;;  %vm832_vm8 = vcmp.lt.s32.totalorder %v1695_v9, 1  ;;  %vm961_vm9 = vc.u32 %v1725_v60, %v1728_v62  ;;  %v962_v20 = vadd.s32 1, %v1729_v63 }
 0x128   : > { %v828_v22 = vor.u32 %v827_v6, %v826_v5  ;;  %vm833_vm10 = vcmp.lt.s32.totalorder %v1695_v9, 2  ;;  %v831_v24 = vor.u32 %v830_v7, %v829_v18  ;;  %vm834_vm11 = vcmp.lt.s32.totalorder %v1695_v9, 3 }
 0x129   : > { %vm835_vm12 = vcmp.lt.s32.totalorder %v1695_v9, 4  ;;  %v840_v25 = vsel %vm832_vm8, %v819_v0, %v822_v1  ;;  %v963_v8 = vsel %vm961_vm9, %v962_v20, %v1729_v63  ;;  %v844_v15 = vsel %vm832_vm8, %v822_v1, %v825_v14 }
 0x12a   : > { %v837_v26 = vsel %vm835_vm12, %v825_v14, 2102212464  ;;  %v841_v27 = vsel %vm835_vm12, %v828_v22, 920167782  ;;  %v964_v28 = vadd.s32 %v963_v8, %v959_v12  ;;  %v836_v29 = vsel %vm832_vm8, %v816_v4, %v819_v0 }
 0x12b   : > { %v842_v31 = vsel %vm834_vm11, %v825_v14, %v841_v27  ;;  %v845_v32 = vsel %vm835_vm12, %v831_v24, 1326507024  ;;  %v838_v33 = vsel %vm834_vm11, %v822_v1, %v837_v26  ;;  %v1122_v36 = vadd.s32 1, %v1701_v16 }
 0x12c   : > { %v843_v34 = vsel %vm833_vm10, %v840_v25, %v842_v31  ;;  %v846_v35 = vsel %vm834_vm11, %v828_v22, %v845_v32  ;;  %v965_v37 = vadd.s32 536870912, %v964_v28  ;;  %v1119_v43 = vand.u32 8388607, %v1112_v11 }
 0x12d   : > { %v847_v38 = vsel %vm833_vm10, %v844_v15, %v846_v35  ;;  %v1752_v39 = vmul.u32.u64.low %v1697_v10, %v843_v34  ;;  %v1753_v40 = vmul.u32.u64.high %v1697_v10, %v843_v34, %v1752_v39  ;;  %vm1123_vm13 = vcmp.gt.s32.totalorder %v1122_v36, 0 }
 0x12e   : > { %v1757_v41 = vmul.u32.u64.low %v1697_v10, %v847_v38  ;;  %v1758_v42 = vmul.u32.u64.high %v1697_v10, %v847_v38, %v1757_v41  ;;  %v966_v46 = vshrl.u32 %v965_v37, 30  ;;  %v839_v16 = vsel %vm833_vm10, %v836_v29, %v838_v33 }
 0x12f   : > { %v1124_v48 = vsel %vm1123_vm13, %v1122_v36, 0  ;;  %v858_v52 = vadd.s32 1, %v1753_v40  ;;  %v855_v53 = vmul.u32 %v1697_v10, %v839_v16  ;;  %v1120_v54 = vor.u32 8388608, %v1119_v43 }
 0x130   : > { %v1126_v49 = vand.u32 31, %v1124_v48  ;;  %v967_v51 = vshll.u32 %v966_v46, 30  ;;  %vm857_vm14 = vc.u32 %v1758_v42, %v1752_v39  ;;  %v990_v58 = vsub.s32 4, %v966_v46 }
 0x131   : > { %v859_v57 = vsel %vm857_vm14, %v858_v52, %v1753_v40  ;;  %v960_v10 = vadd.s32 %v1728_v62, %v1725_v60  ;;  %v1781_v3 = vshll.u32 %v1120_v54, 8  ;;  %v1011_v4 = vand.u32 2139095040, %v1690_v61 }
 0x132   : > { %v1127_v55 = vsub.s32 32, %v1126_v49  ;;  %v1768_v56 = vsub.s32 %v964_v28, %v967_v51  ;;  %v860_v63 = vadd.s32 %v859_v57, %v855_v53  ;;  %v1785_v6 = vshrl.u32 %v1124_v48, 5 }
 0x133   : > { %v1791_v60 = vsel %vm906_vm0, %v990_v58, %v966_v46  ;;  %v1129_v12 = vshll.u32 %v1580_v13, %v1126_v49  ;;  %v1132_v20 = vshll.u32 %v1581_v17, %v1126_v49  ;;  %v1135_v22 = vshll.u32 %v1582_v19, %v1126_v49 }
 0x134   : > { %v970_v0 = vsub.s32 0, %v1768_v56  ;;  %v861_v1 = vadd.s32 536870912, %v860_v63  ;;  %v1130_v2 = vshrl.u32 %v1581_v17, %v1127_v55  ;;  %v1133_v47 = vshrl.u32 %v1582_v19, %v1127_v55 }
 0x135   : > { %v1136_v7 = vshrl.u32 %v1583_v21, %v1127_v55  ;;  %v1139_v14 = vshrl.u32 %v1584_v23, %v1127_v55  ;;  %v1142_v24 = vshrl.u32 %v1585_v30, %v1127_v55  ;;  %v1138_v26 = vshll.u32 %v1583_v21, %v1126_v49 }
 0x136   : > { %v1315_v5 = vmin.u32 %v970_v0, %v1768_v56  ;;  %v1793_v62 = vshrl.u32 %v861_v1, 30  ;;  %v1131_v8 = vor.u32 %v1130_v2, %v1129_v12  ;;  %v1012_v27 = vshrl.u32 %v1011_v4, 23 }
 0x137   : > { %v1134_v28 = vor.u32 %v1133_v47, %v1132_v20  ;;  %v1137_v29 = vor.u32 %v1136_v7, %v1135_v22  ;;  %v1141_v31 = vshll.u32 %v1584_v23, %v1126_v49  ;;  %v993_v32 = vsel %vm1773_vm15, 0, %v1791_v60 }
 0x138   : > { %v972_v18 = vclz %v1315_v5  ;;  %v863_v25 = vshll.u32 %v1793_v62, 30  ;;  %v1128_v34 = vshrl.u32 %v1580_v13, %v1127_v55  ;;  %v1140_v35 = vor.u32 %v1139_v14, %v1138_v26 }
 0x139   : > { %v886_v36 = vsub.s32 4, %v1793_v62  ;;  %v1143_v37 = vor.u32 %v1142_v24, %v1141_v31  ;;  %vm1144_vm2 = vcmp.lt.s32.totalorder %v1785_v6, 1  ;;  %vm1146_vm3 = vcmp.lt.s32.totalorder %v1785_v6, 3 }
 0x13a   : > { %v1316_v15 = vadd.s32 4294967294, %v972_v18  ;;  %v1806_v33 = vsub.s32 %v860_v63, %v863_v25  ;;  %vm1147_vm4 = vcmp.lt.s32.totalorder %v1785_v6, 4  ;;  %vm802_vm5 = vcmp.lt.s32.totalorder %v1678_v45, 0 }
 0x13b   : > { %v1149_v46 = vsel %vm1147_vm4, %v1137_v29, 2102212464  ;;  %v1152_v16 = vsel %vm1144_vm2, %v1131_v8, %v1134_v28  ;;  %v1153_v51 = vsel %vm1147_vm4, %v1140_v35, 920167782  ;;  %v1156_v52 = vsel %vm1144_vm2, %v1134_v28, %v1137_v29 }
 0x13c   : > { %vm1317_vm1 = vcmp.lt.s32.totalorder %v1316_v15, 0  ;;  %v866_v40 = vsub.s32 0, %v1806_v33  ;;  %v1154_v55 = vsel %vm1146_vm3, %v1137_v29, %v1153_v51  ;;  %v1157_v57 = vsel %vm1147_vm4, %v1143_v37, 1326507024 }
 0x13d   : > { %v975_v38 = vsel %vm1317_vm1, 0, %v1316_v15  ;;  %vm1825_vm6 = vcmp.le.f32.partialorder %v800_v50, 0.7853982  ;;  %vm1145_vm7 = vcmp.lt.s32.totalorder %v1785_v6, 2  ;;  %v1158_v4 = vsel %vm1146_vm3, %v1140_v35, %v1157_v57 }
 0x13e   : > { %v976_v41 = vsub.s32 32, %v975_v38  ;;  %v980_v43 = vsub.s32 4294967266, %v975_v38  ;;  %v977_v48 = vshll.u32 %v1768_v56, %v975_v38  ;;  %v1311_v49 = vmin.u32 %v866_v40, %v1806_v33 }
 0x13f   : > { %v1148_v56 = vsel %vm1144_vm2, %v1128_v34, %v1131_v8  ;;  %v1155_v2 = vsel %vm1145_vm7, %v1152_v16, %v1154_v55  ;;  %v1159_v50 = vsel %vm1145_vm7, %v1156_v52, %v1158_v4  ;;  %v1008_v18 = vand.u32 2147483647, %v1690_v61 }
 0x140   : > { %v978_v53 = vshrl.u32 %v960_v10, %v976_v41  ;;  %v981_v54 = vadd.s32 127, %v980_v43  ;;  %v868_v63 = vclz %v1311_v49  ;;  %v1150_v10 = vsel %vm1146_vm3, %v1134_v28, %v1149_v46 }
 0x141   : > { %v1837_v47 = vmul.u32.u64.low %v1781_v3, %v1155_v2  ;;  %v1838_v7 = vmul.u32.u64.high %v1781_v3, %v1155_v2, %v1837_v47  ;;  %v1841_v12 = vmul.u32.u64.low %v1781_v3, %v1159_v50  ;;  %v1842_v14 = vmul.u32.u64.high %v1781_v3, %v1159_v50, %v1841_v12 }
 0x142   : > { %v979_v0 = vor.u32 %v978_v53, %v977_v48  ;;  %v982_v1 = vshll.u32 %v981_v54, 23  ;;  %v1312_v5 = vadd.s32 4294967294, %v868_v63  ;;  %v856_v20 = vadd.s32 %v1752_v39, %v1758_v42 }
 0x143   : > { %v1151_v22 = vsel %vm1145_vm7, %v1148_v56, %v1150_v10  ;;  %v1318_v6 = vadd.s32 4294967169, %v1012_v27  ;;  %v997_v8 = vadd.s32 3, %v993_v32  ;;  %v887_v29 = vsel %vm802_vm5, %v886_v36, %v1793_v62 }
 0x144   : > { %v983_v60 = vor.u32 4788187, %v982_v1  ;;  %vm1313_vm8 = vcmp.lt.s32.totalorder %v1312_v5, 0  ;;  %v986_v25 = vcvt.s32.f32 %v979_v0  ;;  %v1170_v31 = vadd.s32 1, %v1838_v7 }
 0x145   : > { %v871_v26 = vsel %vm1313_vm8, 0, %v1312_v5  ;;  %v1167_v35 = vmul.u32 %v1781_v3, %v1151_v22  ;;  %vm1169_vm9 = vc.u32 %v1842_v14, %v1837_v47  ;;  %v1018_v39 = vadd.s32 1, %v1318_v6 }
 0x146   : > { %v984_v24 = vand.u32 2147483647, %v983_v60  ;;  %v872_v15 = vsub.s32 32, %v871_v26  ;;  %v876_v28 = vsub.s32 4294967266, %v871_v26  ;;  %v873_v42 = vshll.u32 %v1806_v33, %v871_v26 }
 0x147   : > { %v1171_v32 = vsel %vm1169_vm9, %v1170_v31, %v1838_v7  ;;  %v889_v40 = vsel %vm1825_vm6, 0, %v887_v29  ;;  %vm1019_vm10 = vcmp.gt.s32.totalorder %v1018_v39, 0  ;;  %v1015_v51 = vand.u32 8388607, %v1008_v18 }
 0x148   : > { %v987_v34 = vmul.f32 %v986_v25, %v984_v24  ;;  %v874_v27 = vshrl.u32 %v856_v20, %v872_v15  ;;  %v877_v37 = vadd.s32 127, %v876_v28  ;;  %v1172_v41 = vadd.s32 %v1171_v32, %v1167_v35 }
 0x149   : > { %v1020_v43 = vsel %vm1019_vm10, %v1018_v39, 0  ;;  %v893_v49 = vadd.s32 3, %v889_v40  ;;  %v1864_v52 = vand.u32 3, %v997_v8  ;;  %v1875_v1 = vadd.s32 %v1837_v47, %v1842_v14 }
 0x14a   : > { %v988_v38 = vxor.u32 2147483648, %v987_v34  ;;  %v875_v62 = vor.u32 %v874_v27, %v873_v42  ;;  %v878_v36 = vshll.u32 %v877_v37, 23  ;;  %v1173_v46 = vadd.s32 536870912, %v1172_v41 }
 0x14b   : > { %v1022_v16 = vand.u32 31, %v1020_v43  ;;  %v1869_v10 = vand.u32 3, %v893_v49  ;;  %vm1003_vm11 = vcmp.eq.s32.totalorder %v1864_v52, 2  ;;  %v1016_v4 = vor.u32 8388608, %v1015_v51 }
 0x14c   : > { %v989_v3 = vsel %vm906_vm0, %v988_v38, %v987_v34  ;;  %v879_v48 = vor.u32 4788187, %v878_v36  ;;  %v1866_v53 = vshrl.u32 %v1173_v46, 30  ;;  %v882_v57 = vcvt.s32.f32 %v875_v62 }
 0x14d   : > { %v992_v33 = vsel %vm1773_vm15, %v1676_v44, %v989_v3  ;;  %v1023_v54 = vsub.s32 32, %v1022_v16  ;;  %vm1000_vm12 = vcmp.eq.s32.totalorder %v1864_v52, 0  ;;  %v1025_v7 = vshll.u32 %v1580_v13, %v1022_v16 }
 0x14e   : > { %1500 = vcosq.f32 %v992_v33  ;;  %v880_v55 = vand.u32 2147483647, %v879_v48  ;;  %v1175_v63 = vshll.u32 %v1866_v53, 30  ;;  %v1028_v60 = vshll.u32 %v1581_v17, %v1022_v16 }
 0x14f   : > { %1502 = vsinq.f32 %v992_v33  ;;  %v1026_v9 = vshrl.u32 %v1581_v17, %v1023_v54  ;;  %v1029_v0 = vshrl.u32 %v1582_v19, %v1023_v54  ;;  %v1035_v5 = vshrl.u32 %v1584_v23, %v1023_v54 }
 0x150   : > { %v883_v56 = vmul.f32 %v882_v57, %v880_v55  ;;  %v1877_v2 = vsub.s32 %v1172_v41, %v1175_v63  ;;  %v1032_v12 = vshrl.u32 %v1583_v21, %v1023_v54  ;;  %vm999_vm13 = vcmp.lt.s32.totalorder %v1864_v52, 2 }
 0x151   : > { %v1886_v47 = vshrl.u32 %v1020_v43, 5  ;;  %v1031_v14 = vshll.u32 %v1582_v19, %v1022_v16  ;;  %v1034_v22 = vshll.u32 %v1583_v21, %v1022_v16  ;;  %vm996_vm14 = vweird.f32 %v1676_v44 }
 0x152   : > { %v884_v50 = vxor.u32 2147483648, %v883_v56  ;;  %v1178_v20 = vsub.s32 0, %v1877_v2  ;;  %v1027_v24 = vor.u32 %v1026_v9, %v1025_v7  ;;  %v1030_v25 = vor.u32 %v1029_v0, %v1028_v60 }
 0x153   : > { %v1038_v17 = vshrl.u32 %v1585_v30, %v1023_v54  ;;  %v1036_v15 = vor.u32 %v1035_v5, %v1034_v22  ;;  %v1037_v19 = vshll.u32 %v1584_v23, %v1022_v16  ;;  %v1024_v21 = vshrl.u32 %v1580_v13, %v1023_v54 }
 0x154   : > { %v885_v6 = vsel %vm802_vm5, %v884_v50, %v883_v56  ;;  %v1323_v26 = vmin.u32 %v1178_v20, %v1877_v2  ;;  %v1033_v28 = vor.u32 %v1032_v12, %v1031_v14  ;;  %v1900_v29 = vshll.u32 %v1016_v4, 8 }
 0x155   : > { %v888_v8 = vsel %vm1825_vm6, %v1678_v45, %v885_v6  ;;  %v1039_v35 = vor.u32 %v1038_v17, %v1037_v19  ;;  %vm1040_vm15 = vcmp.lt.s32.totalorder %v1886_v47, 1  ;;  %vm1041_vm0 = vcmp.lt.s32.totalorder %v1886_v47, 2 }
 0x156   : > { %1504 = vcosq.f32 %v888_v8  ;;  %v1180_v34 = vclz %v1323_v26  ;;  %vm1043_vm1 = vcmp.lt.s32.totalorder %v1886_v47, 4  ;;  %v1048_v13 = vsel %vm1040_vm15, %v1027_v24, %v1030_v25 }
 0x157   : > { %1506 = vsinq.f32 %v888_v8  ;;  %vm1042_vm2 = vcmp.lt.s32.totalorder %v1886_v47, 3  ;;  %v1049_v42 = vsel %vm1043_vm1, %v1036_v15, 920167782  ;;  %v1045_v37 = vsel %vm1043_vm1, %v1033_v28, 2102212464 }
 0x158   : > { %v1501_v31 = vpop.eup %1500  ;;  %v1324_v39 = vadd.s32 4294967294, %v1180_v34  ;;  %v1050_v32 = vsel %vm1042_vm2, %v1033_v28, %v1049_v42  ;;  %v1052_v38 = vsel %vm1040_vm15, %v1030_v25, %v1033_v28  ;;  %v1053_v62 = vsel %vm1043_vm1, %v1039_v35, 1326507024 }
 0x159   : > { %v1503_v30 = vpop.eup %1502  ;;  %v1004_v58 = vxor.u32 2147483648, %v1501_v31  ;;  %v1051_v41 = vsel %vm1041_vm0, %v1048_v13, %v1050_v32  ;;  %v1044_v3 = vsel %vm1040_vm15, %v1024_v21, %v1027_v24  ;;  %v1054_v46 = vsel %vm1042_vm2, %v1036_v15, %v1053_v62 }
 0x15a   : > { %v1001_v23 = vxor.u32 2147483648, %v1503_v30  ;;  %vm1325_vm3 = vcmp.lt.s32.totalorder %v1324_v39, 0  ;;  %v1046_v49 = vsel %vm1042_vm2, %v1030_v25, %v1045_v37  ;;  %v1055_v52 = vsel %vm1041_vm0, %v1052_v38, %v1054_v46 }
 0x15b   : > { %v1005_v27 = vsel %vm1003_vm11, %v1004_v58, %v1503_v30  ;;  %v1183_v43 = vsel %vm1325_vm3, 0, %v1324_v39  ;;  %v1937_v54 = vmul.u32.u64.low %v1900_v29, %v1051_v41  ;;  %v1938_v55 = vmul.u32.u64.high %v1900_v29, %v1051_v41, %v1937_v54 }
 0x15c   : > { %v1002_v40 = vsel %vm1000_vm12, %v1501_v31, %v1001_v23  ;;  %v1184_v33 = vsub.s32 32, %v1183_v43  ;;  %v1188_v48 = vsub.s32 4294967266, %v1183_v43  ;;  %v1185_v51 = vshll.u32 %v1877_v2, %v1183_v43 }
 0x15d   : > { %v1006_v36 = vsel %vm999_vm13, %v1002_v40, %v1005_v27  ;;  %v1942_v63 = vmul.u32.u64.low %v1900_v29, %v1055_v52  ;;  %v1943_v56 = vmul.u32.u64.high %v1900_v29, %v1055_v52, %v1942_v63  ;;  %v1047_v2 = vsel %vm1041_vm0, %v1044_v3, %v1046_v49 }
 0x15e   : > { %v1007_v16 = vsel %vm996_vm14, nan, %v1006_v36  ;;  %v1186_v44 = vshrl.u32 %v1875_v1, %v1184_v33  ;;  %v1189_v57 = vadd.s32 127, %v1188_v48  ;;  %vm899_vm4 = vcmp.eq.s32.totalorder %v1869_v10, 2 }
 0x15f   : > { %1217 = vst [vmem:[%s1930_s9 + $0x8] sm:$0xff] %v1007_v16  ;;  %v1066_v60 = vadd.s32 1, %v1938_v55  ;;  %vm892_vm5 = vweird.f32 %v1678_v45  ;;  %vm896_vm6 = vcmp.eq.s32.totalorder %v1869_v10, 0  ;;  %vm895_vm7 = vcmp.lt.s32.totalorder %v1869_v10, 2 }
 0x160   : > { %v1505_v9 = vpop.eup %1504  ;;  %v1187_v5 = vor.u32 %v1186_v44, %v1185_v51  ;;  %v1190_v50 = vshll.u32 %v1189_v57, 23  ;;  %v1063_v14 = vmul.u32 %v1900_v29, %v1047_v2  ;;  %vm1065_vm8 = vc.u32 %v1943_v56, %v1937_v54 }
 0x161   : > { %v1507_v0 = vpop.eup %1506  ;;  %v900_v4 = vxor.u32 2147483648, %v1505_v9  ;;  %v1067_v24 = vsel %vm1065_vm8, %v1066_v60, %v1938_v55  ;;  %v1198_v8 = vsub.s32 4, %v1866_v53  ;;  %vm1114_vm9 = vcmp.lt.s32.totalorder %v1688_v59, 0 }
 0x162   : > { %v897_v7 = vxor.u32 2147483648, %v1507_v0  ;;  %v1191_v12 = vor.u32 4788187, %v1190_v50  ;;  %v1194_v6 = vcvt.s32.f32 %v1187_v5  ;;  %v1068_v17 = vadd.s32 %v1067_v24, %v1063_v14 }
 0x163   : > { %v901_v1 = vsel %vm899_vm4, %v900_v4, %v1507_v0  ;;  %vm1113_vm10 = vcmp.le.f32.partialorder %v1112_v11, 0.7853982  ;;  %v1199_v21 = vsel %vm1114_vm9, %v1198_v8, %v1866_v53  ;;  %v1064_v38 = vadd.s32 %v1937_v54, %v1943_v56 }
 0x164   : > { %v898_v20 = vsel %vm896_vm6, %v1505_v9, %v897_v7  ;;  %v1192_v22 = vand.u32 2147483647, %v1191_v12  ;;  %v1069_v26 = vadd.s32 536870912, %v1068_v17  ;;  %v1201_v31 = vsel %vm1113_vm10, 0, %v1199_v21 }
 0x165   : > { %v902_v47 = vsel %vm895_vm7, %v898_v20, %v901_v1  ;;  %v1205_v30 = vadd.s32 3, %v1201_v31  ;;  %vm1204_vm14 = vweird.f32 %v1688_v59  ;;  %vm1010_vm0 = vcmp.lt.s32.totalorder %v1690_v61, 0 }
 0x166   : > { %v903_v25 = vsel %vm892_vm5, nan, %v902_v47  ;;  %v1195_v45 = vmul.f32 %v1194_v6, %v1192_v22  ;;  %v1070_v10 = vshrl.u32 %v1069_v26, 30  ;;  %vm1009_vm1 = vcmp.le.f32.partialorder %v1008_v18, 0.7853982 }
 0x167   : > { %1216 = vst [vmem:[%s1930_s9] sm:$0xff] %v903_v25  ;;  %v1206_v23 = vand.u32 3, %v1205_v30  ;;  %vm1100_vm5 = vweird.f32 %v1690_v61 }
 0x168   : > { %v1196_v15 = vxor.u32 2147483648, %v1195_v45  ;;  %v1071_v29 = vshll.u32 %v1070_v10, 30  ;;  %v1094_v44 = vsub.s32 4, %v1070_v10 }
 0x169   : > { %vm1208_vm12 = vcmp.eq.s32.totalorder %v1206_v23, 0  ;;  %vm1211_vm13 = vcmp.eq.s32.totalorder %v1206_v23, 2  ;;  %vm1207_vm15 = vcmp.lt.s32.totalorder %v1206_v23, 2 }
 0x16a   : > { %v1197_v19 = vsel %vm1114_vm9, %v1196_v15, %v1195_v45  ;;  %v1072_v34 = vsub.s32 %v1068_v17, %v1071_v29  ;;  %v1095_v57 = vsel %vm1010_vm0, %v1094_v44, %v1070_v10 }
 0x16b   : > { %v1200_v28 = vsel %vm1113_vm10, %v1688_v59, %v1197_v19  ;;  %v1097_v56 = vsel %vm1009_vm1, 0, %v1095_v57 }
 0x16c   : > { %1508 = vcosq.f32 %v1200_v28  ;;  %v1074_v35 = vsub.s32 0, %v1072_v34  ;;  %v1101_v9 = vadd.s32 3, %v1097_v56 }
 0x16d   : > { %1510 = vsinq.f32 %v1200_v28 }
 0x16e   : > { %v1319_v58 = vmin.u32 %v1074_v35, %v1072_v34  ;;  %v1102_v0 = vand.u32 3, %v1101_v9 }
 0x170   : > { %v1076_v13 = vclz %v1319_v58  ;;  %vm1107_vm2 = vcmp.eq.s32.totalorder %v1102_v0, 2  ;;  %vm1104_vm3 = vcmp.eq.s32.totalorder %v1102_v0, 0  ;;  %vm1103_vm4 = vcmp.lt.s32.totalorder %v1102_v0, 2 }
 0x172   : > { %v1320_v39 = vadd.s32 4294967294, %v1076_v13 }
 0x174   : > { %vm1321_vm11 = vcmp.lt.s32.totalorder %v1320_v39, 0 }
 0x175   : > { %v1079_v53 = vsel %vm1321_vm11, 0, %v1320_v39 }
 0x176   : > { %v1509_v42 = vpop.eup %1508  ;;  %v1080_v40 = vsub.s32 32, %v1079_v53  ;;  %v1084_v41 = vsub.s32 4294967266, %v1079_v53  ;;  %v1081_v43 = vshll.u32 %v1072_v34, %v1079_v53 }
 0x177   : > { %v1511_v27 = vpop.eup %1510  ;;  %v1212_v37 = vxor.u32 2147483648, %v1509_v42 }
 0x178   : > { %v1209_v11 = vxor.u32 2147483648, %v1511_v27  ;;  %v1082_v3 = vshrl.u32 %v1064_v38, %v1080_v40  ;;  %v1085_v46 = vadd.s32 127, %v1084_v41 }
 0x179   : > { %v1213_v32 = vsel %vm1211_vm13, %v1212_v37, %v1511_v27 }
 0x17a   : > { %v1210_v62 = vsel %vm1208_vm12, %v1509_v42, %v1209_v11  ;;  %v1083_v33 = vor.u32 %v1082_v3, %v1081_v43  ;;  %v1086_v48 = vshll.u32 %v1085_v46, 23 }
 0x17b   : > { %v1214_v36 = vsel %vm1207_vm15, %v1210_v62, %v1213_v32 }
 0x17c   : > { %v1215_v16 = vsel %vm1204_vm14, nan, %v1214_v36  ;;  %v1087_v49 = vor.u32 4788187, %v1086_v48  ;;  %v1090_v52 = vcvt.s32.f32 %v1083_v33 }
 0x17d   : > { %1219 = vst [vmem:[%s1930_s9 + $0x18] sm:$0xff] %v1215_v16 }
 0x17e   : > { %v1088_v51 = vand.u32 2147483647, %v1087_v49 }
 0x180   : > { %v1091_v55 = vmul.f32 %v1090_v52, %v1088_v51 }
 0x182   : > { %v1092_v54 = vxor.u32 2147483648, %v1091_v55 }
 0x184   : > { %v1093_v59 = vsel %vm1010_vm0, %v1092_v54, %v1091_v55 }
 0x185   : > { %v1096_v63 = vsel %vm1009_vm1, %v1690_v61, %v1093_v59 }
 0x186   : > { %1512 = vcosq.f32 %v1096_v63 }
 0x187   : > { %1514 = vsinq.f32 %v1096_v63 }
 0x190   : > { %v1513_v4 = vpop.eup %1512 }
 0x191   : > { %v1515_v5 = vpop.eup %1514  ;;  %v1108_v50 = vxor.u32 2147483648, %v1513_v4  ;;  %1227 = sbr.rel (!%p1647_p5) target bundleno = 436 (0x1b4), region = 36 }
 0x192   : > { %v1105_v2 = vxor.u32 2147483648, %v1515_v5 }
 0x193   : > { %v1109_v7 = vsel %vm1107_vm2, %v1108_v50, %v1515_v5 }
 0x194   : > { %v1106_v18 = vsel %vm1104_vm3, %v1513_v4, %v1105_v2 }
 0x195   : > { %v1110_v60 = vsel %vm1103_vm4, %v1106_v18, %v1109_v7 }
 0x196   : > { %v1111_v1 = vsel %vm1100_vm5, nan, %v1110_v60 }
 0x197   : > { %1218 = vst [vmem:[%s1930_s9 + $0x10] sm:$0xff] %v1111_v1 }
 0x198   : > { %s2049_s11 = smov (!%p1230_p11, %s1229_s11), 4 }
 0x199   : > { %s1978_s17 = sshll.u32 %s2049_s11, 7 }
 0x19a   : > { %s1234_s19 = ssub.s32 512, %s1978_s17 }
 0x19b   : > { %1235 = vsyncadd %s1973_s10, %s1234_s19  ;;  %p1329_p12 = scmp.ne.s32.totalorder %s1978_s17, 0  ;;  %s1335_s20 = sshll.u32 %s1630_s16, 9 }
 0x19c   : > { %s1987_s25 = scalar_lea.hbm %s2037_s3, %s1335_s20  ;;  %s1240_s26 = sshll.u32 %s1930_s9, 4  ;;  %s1990_s26 = int_to_ptr.vmem [resolvable:$true] %s1240_s26 }
 0x19d   : > { %s1516_s27 = scalar_lea.vmem %s1990_s26, %s1978_s17  ;;  %s1586_s28 = smov [#allocation2]  }
 0x19e   : > { %p1517_p13 = scmp.ne.s32.totalorder %s1990_s26, %s1516_s27  ;;  %s1520_s29 = sshll.u32 %s1586_s28, 4  ;;  %s1521_s29 = int_to_ptr.vmem [resolvable:$false] %s1520_s29 }
 0x19f   : > { %s1522_s16 = scalar_lea.vmem %s1521_s29, 1024  ;;  %p1523_p2 = scmp.lt.s32.totalorder %s1990_s26, %s1521_s29 }
 0x1a0   : > { %p1518_p0 = pnand %p1517_p13, %p1329_p12  ;;  %p1524_p3 = scmp.lt.s32.totalorder %s1522_s16, %s1516_s27 }
 0x1a2   : > { %p1519_p1 = pneg %p1518_p0  ;;  %p1525_p4 = por %p1524_p3, %p1523_p2 }
 0x1a4   : > { %p1526_p5 = pnand %p1525_p4, %p1519_p1 }
 0x1a6   : > { %1529 = shalt.err (!%p1526_p5)
}
 0x1a7   : > { %s1530_s30 = scalar_lea.hbm %s1987_s25, %s1978_s17  ;;  %s1534_s6 = scalar_lea.hbm %s2037_s3, 896 }
 0x1a8   : > { %p1531_p7 = scmp.ne.s32.totalorder %s1987_s25, %s1530_s30  ;;  %p1535_p10 = scmp.lt.u32.totalorder %s1987_s25, %s2037_s3 }
 0x1a9   : > { %p1536_p11 = scmp.lt.u32.totalorder %s1534_s6, %s1530_s30  ;;  %p1538_p0 = scmp.lt.u32.totalorder %s1530_s30, %s1987_s25 }
 0x1aa   : > { %p1532_p8 = pnand %p1531_p7, %p1329_p12 }
 0x1ab   : > { %p1537_p13 = por %p1536_p11, %p1535_p10 }
 0x1ac   : > { %p1533_p9 = pneg %p1532_p8 }
 0x1ad   : > { %p1539_p1 = por %p1538_p0, %p1537_p13 }
 0x1af   : > { %p1540_p2 = pnand %p1539_p1, %p1533_p9 }
 0x1b1   : > { %1543 = shalt.err (!%p1540_p2)
}
 0x1b2   : > { %s1587_s9 = smov 128   ;;  %s1588_s11 = smov 8  }
 0x1b3   : > { %1246 = dma.vmem_to_hbm [thread:$0]  (%p1329_p12), %s1990_s26, %s1978_s17, %s1987_s25, %s1973_s10, %s1587_s9, %s1587_s9, %s1588_s11  }
 0x1b4 PF: > { %p1459_p3 = scmp.ge.s32.totalorder %s1578_s15, 2  ;;  %s1255_s19 = sand.u32 1, %s1566_s12  }
 0x1b5   : > { %s1256_s20 = scalar_lea.sflag [#allocation3], %s1255_s19 }
 0x1b6   : > { %p1456_p4 = pnand %p1459_p3, %p1651_p6 }
 0x1b8   : > { %1561 = dma.done.wait (!%p1456_p4), %s1256_s20, 512  }
 0x1b9   : > { %1563 = vsyncadd (!%p1456_p4), %s1256_s20, 4294966784  ;;  %p13_p5 = scmp.ge.s32.totalorder %s1634_s18, 4   ;;  %s2044_s12 = smov %s1570_s13 }
 0x1ba   : > { %s2045_s13 = smov %s1574_s14  ;;  %s2046_s14 = smov %s1645_s21 }
 0x1bb   : > { %s2047_s15 = smov %s1634_s18  ;;  %15 = sbr.rel (!%p13_p5) target bundleno = 3 (0x3), region = 67 }
 0x1c2   :  { %1261 = vsyncpa [#allocation3], 1 }
 0x1c3   :  { %1263 = vsyncpa [#allocation3 + $0x1], 1 }

</bundles_post_ra>
